<compile_context>
chip_gen: v7x
topology: tpu7x:2x2x1
jax: 0.10.0
libtpu: 0.0.40
codegen_flags: <defaults>
</compile_context>

<pallas_src>
import jax
import jax.numpy as jnp
from jax.experimental import pallas as pl
from jax.experimental.pallas import tpu as pltpu

INPUT_SIZE = 30
HIDDEN = 8


def lstm_softmax_kernel(x_ref, h0_ref, c0_ref, wih_ref, whh_ref, b_ref, o_ref):
    """Whole LSTM recurrence + final softmax(c_n) in one kernel invocation.

    x_ref:  (seq_len, batch_p, INPUT_SIZE)  f32
    h0_ref: (batch_p, HIDDEN)               f32
    c0_ref: (batch_p, HIDDEN)               f32
    wih_ref:(INPUT_SIZE, 4*HIDDEN)          f32   pre-transposed, gate order [i,f,o,g]
    whh_ref:(HIDDEN, 4*HIDDEN)              f32   pre-transposed, gate order [i,f,o,g]
    b_ref:  (1, 4*HIDDEN)                   f32   (bias_ih + bias_hh), gate order [i,f,o,g]
    o_ref:  (batch_p, HIDDEN)               f32   softmax(c_n, axis=-1)
    """
    seq_len, batch, in_size = x_ref.shape
    w_ih = wih_ref[...]          # (INPUT_SIZE, 4H)
    w_hh = whh_ref[...]          # (H, 4H)
    b = b_ref[...]               # (1, 4H)

    # Hoisted input projection: ONE matmul over all timesteps, bias folded in.
    x_all = x_ref[...].reshape(seq_len * batch, in_size)
    gates_x = (jnp.dot(x_all, w_ih, preferred_element_type=jnp.float32) + b
               ).reshape(seq_len, batch, 4 * HIDDEN)

    h = h0_ref[...]
    c = c0_ref[...]

    # Fully unrolled recurrence (seq_len is static): only h @ W_hh + elementwise
    # remain on the serial critical path.
    for t in range(seq_len):
        gates = gates_x[t] + jnp.dot(h, w_hh, preferred_element_type=jnp.float32)
        sg = jax.nn.sigmoid(gates[:, : 3 * HIDDEN])   # [i | f | o] in one EUP push
        g = jnp.tanh(gates[:, 3 * HIDDEN:])           # one tanh push
        i = sg[:, 0 * HIDDEN:1 * HIDDEN]
        f = sg[:, 1 * HIDDEN:2 * HIDDEN]
        o = sg[:, 2 * HIDDEN:3 * HIDDEN]
        c = f * c + i * g
        h = o * jnp.tanh(c)

    # out_put = softmax(c_n, dim=-1)
    m = jnp.max(c, axis=-1, keepdims=True)
    e = jnp.exp(c - m)
    s = jnp.sum(e, axis=-1, keepdims=True)
    o_ref[...] = e * pl.reciprocal(s, approx=True)


def _reorder_gates(w):
    """Reorder PyTorch gate blocks [i, f, g, o] -> [i, f, o, g] along axis 0."""
    return jnp.concatenate(
        [w[: 2 * HIDDEN], w[3 * HIDDEN: 4 * HIDDEN], w[2 * HIDDEN: 3 * HIDDEN]],
        axis=0)


def prepare_lstm_params(w_ih, w_hh, b_ih, b_hh):
    """One-time parameter prep (transpose, gate reorder, bias fusion).

    Done outside the per-call wrapper so no transpose/reshape XLA ops precede
    every kernel launch.
    """
    w_ih_t = jnp.transpose(_reorder_gates(w_ih))                 # (INPUT_SIZE, 4H)
    w_hh_t = jnp.transpose(_reorder_gates(w_hh))                 # (HIDDEN, 4H)
    b = _reorder_gates((b_ih + b_hh)).reshape(1, 4 * HIDDEN)     # (1, 4H)
    return w_ih_t, w_hh_t, b


def lstm_forward(x, h0, c0, params):
    """Mirrors LSTM.forward: out, (h_n, c_n) = lstm(x, (h0, c0)); return softmax(c_n)."""
    w_ih_t, w_hh_t, b = params
    seq_len, batch, _ = x.shape

    # Pad batch to a full sublane group (multiple of 8) so per-step vregs are dense.
    batch_p = ((batch + 7) // 8) * 8
    if batch_p != batch:
        pad = batch_p - batch
        x_p = jnp.pad(x, ((0, 0), (0, pad), (0, 0)))
        h0_p = jnp.pad(h0[0], ((0, pad), (0, 0)))
        c0_p = jnp.pad(c0[0], ((0, pad), (0, 0)))
    else:
        x_p, h0_p, c0_p = x, h0[0], c0[0]

    out = pl.pallas_call(
        lstm_softmax_kernel,
        out_shape=jax.ShapeDtypeStruct((batch_p, HIDDEN), jnp.float32),
        in_specs=[pl.BlockSpec(memory_space=pltpu.MemorySpace.VMEM)] * 6,
        out_specs=pl.BlockSpec(memory_space=pltpu.MemorySpace.VMEM),
    )(x_p, h0_p, c0_p, w_ih_t, w_hh_t, b)

    # PyTorch c_n (and hence the softmax output) has shape (num_layers=1, batch, hidden).
    return out[:batch].reshape(1, batch, HIDDEN)


def lstm_forward_ref(x, h0, c0, w_ih, w_hh, b_ih, b_hh):
    """Pure-JAX reference of the same math, PyTorch gate order [i,f,g,o]."""
    h, c = h0[0], c0[0]
    b = b_ih + b_hh
    for t in range(x.shape[0]):
        gates = x[t] @ w_ih.T + h @ w_hh.T + b
        i = jax.nn.sigmoid(gates[:, 0 * HIDDEN:1 * HIDDEN])
        f = jax.nn.sigmoid(gates[:, 1 * HIDDEN:2 * HIDDEN])
        g = jnp.tanh(gates[:, 2 * HIDDEN:3 * HIDDEN])
        o = jax.nn.sigmoid(gates[:, 3 * HIDDEN:4 * HIDDEN])
        c = f * c + i * g
        h = o * jnp.tanh(c)
    return jax.nn.softmax(c, axis=-1).reshape(1, x.shape[1], HIDDEN)


if __name__ == "__main__":
    seq_len, batch = 8, 4
    key = jax.random.PRNGKey(0)
    ks = jax.random.split(key, 7)
    stdv = 1.0 / jnp.sqrt(jnp.float32(HIDDEN))

    # Deterministic synthetic inputs / parameters (shapes match nn.LSTM(30, 8)).
    x = jax.random.normal(ks[0], (seq_len, batch, INPUT_SIZE), jnp.float32)
    h0 = jax.random.normal(ks[1], (1, batch, HIDDEN), jnp.float32)   # hidden[0]
    c0 = jax.random.normal(ks[2], (1, batch, HIDDEN), jnp.float32)   # hidden[1]
    w_ih = jax.random.uniform(ks[3], (4 * HIDDEN, INPUT_SIZE), jnp.float32, -stdv, stdv)
    w_hh = jax.random.uniform(ks[4], (4 * HIDDEN, HIDDEN), jnp.float32, -stdv, stdv)
    b_ih = jax.random.uniform(ks[5], (4 * HIDDEN,), jnp.float32, -stdv, stdv)
    b_hh = jax.random.uniform(ks[6], (4 * HIDDEN,), jnp.float32, -stdv, stdv)

    # One-time parameter prep (transpose / gate reorder / bias fusion).
    params = prepare_lstm_params(w_ih, w_hh, b_ih, b_hh)

    out = lstm_forward(x, h0, c0, params)
    jax.block_until_ready(out)

    ref = lstm_forward_ref(x, h0, c0, w_ih, w_hh, b_ih, b_hh)
    assert out.shape == (1, batch, HIDDEN)
    assert jnp.allclose(out, ref, atol=1e-3, rtol=1e-3)

    print("KERNEL_OK")
</pallas_src>

<mosaic_0001>
module attributes {stable_mosaic.version = 11 : i64} {
  func.func @lstm_softmax_kernel(%arg0: memref<8x8x30xf32, #tpu.memory_space<vmem>>, %arg1: memref<8x8xf32, #tpu.memory_space<vmem>>, %arg2: memref<8x8xf32, #tpu.memory_space<vmem>>, %arg3: memref<30x32xf32, #tpu.memory_space<vmem>>, %arg4: memref<8x32xf32, #tpu.memory_space<vmem>>, %arg5: memref<1x32xf32, #tpu.memory_space<vmem>>, %arg6: memref<8x8xf32, #tpu.memory_space<vmem>>) attributes {dimension_semantics = [], scalar_prefetch = 0 : i64, scratch_operands = 0 : i64, tpu.core_type = #tpu.core_type<tc>} {
    %c0 = arith.constant 0 : index
    %c0_0 = arith.constant 0 : index
    %0 = vector.load %arg3[%c0, %c0_0] : memref<30x32xf32, #tpu.memory_space<vmem>>, vector<30x32xf32>
    %c0_1 = arith.constant 0 : index
    %c0_2 = arith.constant 0 : index
    %1 = vector.load %arg4[%c0_1, %c0_2] : memref<8x32xf32, #tpu.memory_space<vmem>>, vector<8x32xf32>
    %c0_3 = arith.constant 0 : index
    %c0_4 = arith.constant 0 : index
    %2 = vector.load %arg5[%c0_3, %c0_4] : memref<1x32xf32, #tpu.memory_space<vmem>>, vector<1x32xf32>
    %c0_5 = arith.constant 0 : index
    %c0_6 = arith.constant 0 : index
    %c0_7 = arith.constant 0 : index
    %3 = vector.load %arg0[%c0_5, %c0_6, %c0_7] : memref<8x8x30xf32, #tpu.memory_space<vmem>>, vector<8x8x30xf32>
    %4 = vector.shape_cast %3 : vector<8x8x30xf32> to vector<64x30xf32>
    %cst = arith.constant dense<0.000000e+00> : vector<64x32xf32>
    %5 = tpu.matmul %4, %0, %cst {dimension_numbers = #tpu.dot_dimension_numbers<[1], [0], [0], [1], [0, 0, 1, 1], [], []>} : vector<64x30xf32>, vector<30x32xf32>, vector<64x32xf32> -> vector<64x32xf32>
    %6 = vector.broadcast %2 : vector<1x32xf32> to vector<64x32xf32>
    %7 = arith.addf %5, %6 : vector<64x32xf32>
    %8 = vector.shape_cast %7 : vector<64x32xf32> to vector<8x8x32xf32>
    %c0_8 = arith.constant 0 : index
    %c0_9 = arith.constant 0 : index
    %9 = vector.load %arg1[%c0_8, %c0_9] : memref<8x8xf32, #tpu.memory_space<vmem>>, vector<8x8xf32>
    %c0_10 = arith.constant 0 : index
    %c0_11 = arith.constant 0 : index
    %10 = vector.load %arg2[%c0_10, %c0_11] : memref<8x8xf32, #tpu.memory_space<vmem>>, vector<8x8xf32>
    %11 = vector.extract_strided_slice %8 {offsets = [0, 0, 0], sizes = [1, 8, 32], strides = [1, 1, 1]} : vector<8x8x32xf32> to vector<1x8x32xf32>
    %12 = vector.shape_cast %11 : vector<1x8x32xf32> to vector<8x32xf32>
    %cst_12 = arith.constant dense<0.000000e+00> : vector<8x32xf32>
    %13 = tpu.matmul %9, %1, %cst_12 {dimension_numbers = #tpu.dot_dimension_numbers<[1], [0], [0], [1], [0, 0, 1, 1], [], []>} : vector<8x8xf32>, vector<8x32xf32>, vector<8x32xf32> -> vector<8x32xf32>
    %14 = arith.addf %12, %13 : vector<8x32xf32>
    %15 = vector.extract_strided_slice %14 {offsets = [0, 0], sizes = [8, 24], strides = [1, 1]} : vector<8x32xf32> to vector<8x24xf32>
    %16 = arith.negf %15 : vector<8x24xf32>
    %17 = math.exp %16 : vector<8x24xf32>
    %cst_13 = arith.constant 1.000000e+00 : f32
    %18 = vector.broadcast %cst_13 : f32 to vector<8x24xf32>
    %19 = arith.addf %18, %17 : vector<8x24xf32>
    %20 = arith.divf %18, %19 : vector<8x24xf32>
    %21 = vector.extract_strided_slice %14 {offsets = [0, 24], sizes = [8, 8], strides = [1, 1]} : vector<8x32xf32> to vector<8x8xf32>
    %22 = math.tanh %21 : vector<8x8xf32>
    %23 = vector.extract_strided_slice %20 {offsets = [0, 0], sizes = [8, 8], strides = [1, 1]} : vector<8x24xf32> to vector<8x8xf32>
    %24 = vector.extract_strided_slice %20 {offsets = [0, 8], sizes = [8, 8], strides = [1, 1]} : vector<8x24xf32> to vector<8x8xf32>
    %25 = vector.extract_strided_slice %20 {offsets = [0, 16], sizes = [8, 8], strides = [1, 1]} : vector<8x24xf32> to vector<8x8xf32>
    %26 = arith.mulf %24, %10 : vector<8x8xf32>
    %27 = arith.mulf %23, %22 : vector<8x8xf32>
    %28 = arith.addf %26, %27 : vector<8x8xf32>
    %29 = math.tanh %28 : vector<8x8xf32>
    %30 = arith.mulf %25, %29 : vector<8x8xf32>
    %31 = vector.extract_strided_slice %8 {offsets = [1, 0, 0], sizes = [1, 8, 32], strides = [1, 1, 1]} : vector<8x8x32xf32> to vector<1x8x32xf32>
    %32 = vector.shape_cast %31 : vector<1x8x32xf32> to vector<8x32xf32>
    %cst_14 = arith.constant dense<0.000000e+00> : vector<8x32xf32>
    %33 = tpu.matmul %30, %1, %cst_14 {dimension_numbers = #tpu.dot_dimension_numbers<[1], [0], [0], [1], [0, 0, 1, 1], [], []>} : vector<8x8xf32>, vector<8x32xf32>, vector<8x32xf32> -> vector<8x32xf32>
    %34 = arith.addf %32, %33 : vector<8x32xf32>
    %35 = vector.extract_strided_slice %34 {offsets = [0, 0], sizes = [8, 24], strides = [1, 1]} : vector<8x32xf32> to vector<8x24xf32>
    %36 = arith.negf %35 : vector<8x24xf32>
    %37 = math.exp %36 : vector<8x24xf32>
    %cst_15 = arith.constant 1.000000e+00 : f32
    %38 = vector.broadcast %cst_15 : f32 to vector<8x24xf32>
    %39 = arith.addf %38, %37 : vector<8x24xf32>
    %40 = arith.divf %38, %39 : vector<8x24xf32>
    %41 = vector.extract_strided_slice %34 {offsets = [0, 24], sizes = [8, 8], strides = [1, 1]} : vector<8x32xf32> to vector<8x8xf32>
    %42 = math.tanh %41 : vector<8x8xf32>
    %43 = vector.extract_strided_slice %40 {offsets = [0, 0], sizes = [8, 8], strides = [1, 1]} : vector<8x24xf32> to vector<8x8xf32>
    %44 = vector.extract_strided_slice %40 {offsets = [0, 8], sizes = [8, 8], strides = [1, 1]} : vector<8x24xf32> to vector<8x8xf32>
    %45 = vector.extract_strided_slice %40 {offsets = [0, 16], sizes = [8, 8], strides = [1, 1]} : vector<8x24xf32> to vector<8x8xf32>
    %46 = arith.mulf %44, %28 : vector<8x8xf32>
    %47 = arith.mulf %43, %42 : vector<8x8xf32>
    %48 = arith.addf %46, %47 : vector<8x8xf32>
    %49 = math.tanh %48 : vector<8x8xf32>
    %50 = arith.mulf %45, %49 : vector<8x8xf32>
    %51 = vector.extract_strided_slice %8 {offsets = [2, 0, 0], sizes = [1, 8, 32], strides = [1, 1, 1]} : vector<8x8x32xf32> to vector<1x8x32xf32>
    %52 = vector.shape_cast %51 : vector<1x8x32xf32> to vector<8x32xf32>
    %cst_16 = arith.constant dense<0.000000e+00> : vector<8x32xf32>
    %53 = tpu.matmul %50, %1, %cst_16 {dimension_numbers = #tpu.dot_dimension_numbers<[1], [0], [0], [1], [0, 0, 1, 1], [], []>} : vector<8x8xf32>, vector<8x32xf32>, vector<8x32xf32> -> vector<8x32xf32>
    %54 = arith.addf %52, %53 : vector<8x32xf32>
    %55 = vector.extract_strided_slice %54 {offsets = [0, 0], sizes = [8, 24], strides = [1, 1]} : vector<8x32xf32> to vector<8x24xf32>
    %56 = arith.negf %55 : vector<8x24xf32>
    %57 = math.exp %56 : vector<8x24xf32>
    %cst_17 = arith.constant 1.000000e+00 : f32
    %58 = vector.broadcast %cst_17 : f32 to vector<8x24xf32>
    %59 = arith.addf %58, %57 : vector<8x24xf32>
    %60 = arith.divf %58, %59 : vector<8x24xf32>
    %61 = vector.extract_strided_slice %54 {offsets = [0, 24], sizes = [8, 8], strides = [1, 1]} : vector<8x32xf32> to vector<8x8xf32>
    %62 = math.tanh %61 : vector<8x8xf32>
    %63 = vector.extract_strided_slice %60 {offsets = [0, 0], sizes = [8, 8], strides = [1, 1]} : vector<8x24xf32> to vector<8x8xf32>
    %64 = vector.extract_strided_slice %60 {offsets = [0, 8], sizes = [8, 8], strides = [1, 1]} : vector<8x24xf32> to vector<8x8xf32>
    %65 = vector.extract_strided_slice %60 {offsets = [0, 16], sizes = [8, 8], strides = [1, 1]} : vector<8x24xf32> to vector<8x8xf32>
    %66 = arith.mulf %64, %48 : vector<8x8xf32>
    %67 = arith.mulf %63, %62 : vector<8x8xf32>
    %68 = arith.addf %66, %67 : vector<8x8xf32>
    %69 = math.tanh %68 : vector<8x8xf32>
    %70 = arith.mulf %65, %69 : vector<8x8xf32>
    %71 = vector.extract_strided_slice %8 {offsets = [3, 0, 0], sizes = [1, 8, 32], strides = [1, 1, 1]} : vector<8x8x32xf32> to vector<1x8x32xf32>
    %72 = vector.shape_cast %71 : vector<1x8x32xf32> to vector<8x32xf32>
    %cst_18 = arith.constant dense<0.000000e+00> : vector<8x32xf32>
    %73 = tpu.matmul %70, %1, %cst_18 {dimension_numbers = #tpu.dot_dimension_numbers<[1], [0], [0], [1], [0, 0, 1, 1], [], []>} : vector<8x8xf32>, vector<8x32xf32>, vector<8x32xf32> -> vector<8x32xf32>
    %74 = arith.addf %72, %73 : vector<8x32xf32>
    %75 = vector.extract_strided_slice %74 {offsets = [0, 0], sizes = [8, 24], strides = [1, 1]} : vector<8x32xf32> to vector<8x24xf32>
    %76 = arith.negf %75 : vector<8x24xf32>
    %77 = math.exp %76 : vector<8x24xf32>
    %cst_19 = arith.constant 1.000000e+00 : f32
    %78 = vector.broadcast %cst_19 : f32 to vector<8x24xf32>
    %79 = arith.addf %78, %77 : vector<8x24xf32>
    %80 = arith.divf %78, %79 : vector<8x24xf32>
    %81 = vector.extract_strided_slice %74 {offsets = [0, 24], sizes = [8, 8], strides = [1, 1]} : vector<8x32xf32> to vector<8x8xf32>
    %82 = math.tanh %81 : vector<8x8xf32>
    %83 = vector.extract_strided_slice %80 {offsets = [0, 0], sizes = [8, 8], strides = [1, 1]} : vector<8x24xf32> to vector<8x8xf32>
    %84 = vector.extract_strided_slice %80 {offsets = [0, 8], sizes = [8, 8], strides = [1, 1]} : vector<8x24xf32> to vector<8x8xf32>
    %85 = vector.extract_strided_slice %80 {offsets = [0, 16], sizes = [8, 8], strides = [1, 1]} : vector<8x24xf32> to vector<8x8xf32>
    %86 = arith.mulf %84, %68 : vector<8x8xf32>
    %87 = arith.mulf %83, %82 : vector<8x8xf32>
    %88 = arith.addf %86, %87 : vector<8x8xf32>
    %89 = math.tanh %88 : vector<8x8xf32>
    %90 = arith.mulf %85, %89 : vector<8x8xf32>
    %91 = vector.extract_strided_slice %8 {offsets = [4, 0, 0], sizes = [1, 8, 32], strides = [1, 1, 1]} : vector<8x8x32xf32> to vector<1x8x32xf32>
    %92 = vector.shape_cast %91 : vector<1x8x32xf32> to vector<8x32xf32>
    %cst_20 = arith.constant dense<0.000000e+00> : vector<8x32xf32>
    %93 = tpu.matmul %90, %1, %cst_20 {dimension_numbers = #tpu.dot_dimension_numbers<[1], [0], [0], [1], [0, 0, 1, 1], [], []>} : vector<8x8xf32>, vector<8x32xf32>, vector<8x32xf32> -> vector<8x32xf32>
    %94 = arith.addf %92, %93 : vector<8x32xf32>
    %95 = vector.extract_strided_slice %94 {offsets = [0, 0], sizes = [8, 24], strides = [1, 1]} : vector<8x32xf32> to vector<8x24xf32>
    %96 = arith.negf %95 : vector<8x24xf32>
    %97 = math.exp %96 : vector<8x24xf32>
    %cst_21 = arith.constant 1.000000e+00 : f32
    %98 = vector.broadcast %cst_21 : f32 to vector<8x24xf32>
    %99 = arith.addf %98, %97 : vector<8x24xf32>
    %100 = arith.divf %98, %99 : vector<8x24xf32>
    %101 = vector.extract_strided_slice %94 {offsets = [0, 24], sizes = [8, 8], strides = [1, 1]} : vector<8x32xf32> to vector<8x8xf32>
    %102 = math.tanh %101 : vector<8x8xf32>
    %103 = vector.extract_strided_slice %100 {offsets = [0, 0], sizes = [8, 8], strides = [1, 1]} : vector<8x24xf32> to vector<8x8xf32>
    %104 = vector.extract_strided_slice %100 {offsets = [0, 8], sizes = [8, 8], strides = [1, 1]} : vector<8x24xf32> to vector<8x8xf32>
    %105 = vector.extract_strided_slice %100 {offsets = [0, 16], sizes = [8, 8], strides = [1, 1]} : vector<8x24xf32> to vector<8x8xf32>
    %106 = arith.mulf %104, %88 : vector<8x8xf32>
    %107 = arith.mulf %103, %102 : vector<8x8xf32>
    %108 = arith.addf %106, %107 : vector<8x8xf32>
    %109 = math.tanh %108 : vector<8x8xf32>
    %110 = arith.mulf %105, %109 : vector<8x8xf32>
    %111 = vector.extract_strided_slice %8 {offsets = [5, 0, 0], sizes = [1, 8, 32], strides = [1, 1, 1]} : vector<8x8x32xf32> to vector<1x8x32xf32>
    %112 = vector.shape_cast %111 : vector<1x8x32xf32> to vector<8x32xf32>
    %cst_22 = arith.constant dense<0.000000e+00> : vector<8x32xf32>
    %113 = tpu.matmul %110, %1, %cst_22 {dimension_numbers = #tpu.dot_dimension_numbers<[1], [0], [0], [1], [0, 0, 1, 1], [], []>} : vector<8x8xf32>, vector<8x32xf32>, vector<8x32xf32> -> vector<8x32xf32>
    %114 = arith.addf %112, %113 : vector<8x32xf32>
    %115 = vector.extract_strided_slice %114 {offsets = [0, 0], sizes = [8, 24], strides = [1, 1]} : vector<8x32xf32> to vector<8x24xf32>
    %116 = arith.negf %115 : vector<8x24xf32>
    %117 = math.exp %116 : vector<8x24xf32>
    %cst_23 = arith.constant 1.000000e+00 : f32
    %118 = vector.broadcast %cst_23 : f32 to vector<8x24xf32>
    %119 = arith.addf %118, %117 : vector<8x24xf32>
    %120 = arith.divf %118, %119 : vector<8x24xf32>
    %121 = vector.extract_strided_slice %114 {offsets = [0, 24], sizes = [8, 8], strides = [1, 1]} : vector<8x32xf32> to vector<8x8xf32>
    %122 = math.tanh %121 : vector<8x8xf32>
    %123 = vector.extract_strided_slice %120 {offsets = [0, 0], sizes = [8, 8], strides = [1, 1]} : vector<8x24xf32> to vector<8x8xf32>
    %124 = vector.extract_strided_slice %120 {offsets = [0, 8], sizes = [8, 8], strides = [1, 1]} : vector<8x24xf32> to vector<8x8xf32>
    %125 = vector.extract_strided_slice %120 {offsets = [0, 16], sizes = [8, 8], strides = [1, 1]} : vector<8x24xf32> to vector<8x8xf32>
    %126 = arith.mulf %124, %108 : vector<8x8xf32>
    %127 = arith.mulf %123, %122 : vector<8x8xf32>
    %128 = arith.addf %126, %127 : vector<8x8xf32>
    %129 = math.tanh %128 : vector<8x8xf32>
    %130 = arith.mulf %125, %129 : vector<8x8xf32>
    %131 = vector.extract_strided_slice %8 {offsets = [6, 0, 0], sizes = [1, 8, 32], strides = [1, 1, 1]} : vector<8x8x32xf32> to vector<1x8x32xf32>
    %132 = vector.shape_cast %131 : vector<1x8x32xf32> to vector<8x32xf32>
    %cst_24 = arith.constant dense<0.000000e+00> : vector<8x32xf32>
    %133 = tpu.matmul %130, %1, %cst_24 {dimension_numbers = #tpu.dot_dimension_numbers<[1], [0], [0], [1], [0, 0, 1, 1], [], []>} : vector<8x8xf32>, vector<8x32xf32>, vector<8x32xf32> -> vector<8x32xf32>
    %134 = arith.addf %132, %133 : vector<8x32xf32>
    %135 = vector.extract_strided_slice %134 {offsets = [0, 0], sizes = [8, 24], strides = [1, 1]} : vector<8x32xf32> to vector<8x24xf32>
    %136 = arith.negf %135 : vector<8x24xf32>
    %137 = math.exp %136 : vector<8x24xf32>
    %cst_25 = arith.constant 1.000000e+00 : f32
    %138 = vector.broadcast %cst_25 : f32 to vector<8x24xf32>
    %139 = arith.addf %138, %137 : vector<8x24xf32>
    %140 = arith.divf %138, %139 : vector<8x24xf32>
    %141 = vector.extract_strided_slice %134 {offsets = [0, 24], sizes = [8, 8], strides = [1, 1]} : vector<8x32xf32> to vector<8x8xf32>
    %142 = math.tanh %141 : vector<8x8xf32>
    %143 = vector.extract_strided_slice %140 {offsets = [0, 0], sizes = [8, 8], strides = [1, 1]} : vector<8x24xf32> to vector<8x8xf32>
    %144 = vector.extract_strided_slice %140 {offsets = [0, 8], sizes = [8, 8], strides = [1, 1]} : vector<8x24xf32> to vector<8x8xf32>
    %145 = vector.extract_strided_slice %140 {offsets = [0, 16], sizes = [8, 8], strides = [1, 1]} : vector<8x24xf32> to vector<8x8xf32>
    %146 = arith.mulf %144, %128 : vector<8x8xf32>
    %147 = arith.mulf %143, %142 : vector<8x8xf32>
    %148 = arith.addf %146, %147 : vector<8x8xf32>
    %149 = math.tanh %148 : vector<8x8xf32>
    %150 = arith.mulf %145, %149 : vector<8x8xf32>
    %151 = vector.extract_strided_slice %8 {offsets = [7, 0, 0], sizes = [1, 8, 32], strides = [1, 1, 1]} : vector<8x8x32xf32> to vector<1x8x32xf32>
    %152 = vector.shape_cast %151 : vector<1x8x32xf32> to vector<8x32xf32>
    %cst_26 = arith.constant dense<0.000000e+00> : vector<8x32xf32>
    %153 = tpu.matmul %150, %1, %cst_26 {dimension_numbers = #tpu.dot_dimension_numbers<[1], [0], [0], [1], [0, 0, 1, 1], [], []>} : vector<8x8xf32>, vector<8x32xf32>, vector<8x32xf32> -> vector<8x32xf32>
    %154 = arith.addf %152, %153 : vector<8x32xf32>
    %155 = vector.extract_strided_slice %154 {offsets = [0, 0], sizes = [8, 24], strides = [1, 1]} : vector<8x32xf32> to vector<8x24xf32>
    %156 = arith.negf %155 : vector<8x24xf32>
    %157 = math.exp %156 : vector<8x24xf32>
    %cst_27 = arith.constant 1.000000e+00 : f32
    %158 = vector.broadcast %cst_27 : f32 to vector<8x24xf32>
    %159 = arith.addf %158, %157 : vector<8x24xf32>
    %160 = arith.divf %158, %159 : vector<8x24xf32>
    %161 = vector.extract_strided_slice %154 {offsets = [0, 24], sizes = [8, 8], strides = [1, 1]} : vector<8x32xf32> to vector<8x8xf32>
    %162 = math.tanh %161 : vector<8x8xf32>
    %163 = vector.extract_strided_slice %160 {offsets = [0, 0], sizes = [8, 8], strides = [1, 1]} : vector<8x24xf32> to vector<8x8xf32>
    %164 = vector.extract_strided_slice %160 {offsets = [0, 8], sizes = [8, 8], strides = [1, 1]} : vector<8x24xf32> to vector<8x8xf32>
    %165 = arith.mulf %164, %148 : vector<8x8xf32>
    %166 = arith.mulf %163, %162 : vector<8x8xf32>
    %167 = arith.addf %165, %166 : vector<8x8xf32>
    %cst_28 = arith.constant dense<0xFF800000> : vector<8xf32>
    %168 = vector.multi_reduction <maximumf>, %167, %cst_28 [1] : vector<8x8xf32> to vector<8xf32>
    %169 = vector.shape_cast %168 : vector<8xf32> to vector<8x1xf32>
    %170 = vector.broadcast %169 : vector<8x1xf32> to vector<8x8xf32>
    %171 = arith.subf %167, %170 : vector<8x8xf32>
    %172 = math.exp %171 : vector<8x8xf32>
    %cst_29 = arith.constant dense<0.000000e+00> : vector<8xf32>
    %173 = vector.multi_reduction <add>, %172, %cst_29 [1] : vector<8x8xf32> to vector<8xf32>
    %174 = vector.shape_cast %173 : vector<8xf32> to vector<8x1xf32>
    %175 = tpu.reciprocal %174 {approx = true} : vector<8x1xf32> -> vector<8x1xf32>
    %176 = vector.broadcast %175 : vector<8x1xf32> to vector<8x8xf32>
    %177 = arith.mulf %172, %176 : vector<8x8xf32>
    %c0_30 = arith.constant 0 : index
    %c0_31 = arith.constant 0 : index
    %178 = vector.load %arg6[%c0_30, %c0_31] : memref<8x8xf32, #tpu.memory_space<vmem>>, vector<8x8xf32>
    tpu.vector_store %arg6[%c0_30, %c0_31], %177 {strides = array<i32>} : memref<8x8xf32, #tpu.memory_space<vmem>>, vector<8x8xf32>,
    return
  }
}

</mosaic_0001>

<bundles_post_ra>
// kernel: tpu_custom_call.1
= control target key start
LH: loop header
LB: loop body
LE: loop exit
PB: predicated region body
PF: predicated region fallthrough
CT: control target
= control target key end

     0   :  { %11 = vsyncpa [#allocation3], 0  ;;  %s1614_s0 = inlined_call_operand.hbm [shape: f32[8,8,30], index: 0, kind: input, shape index: {}]   ;;  %s1615_s1 = inlined_call_operand.hbm [shape: f32[8,8], index: 1, kind: input, shape index: {}]   ;;  %s1616_s2 = inlined_call_operand.hbm [shape: f32[8,8], index: 2, kind: input, shape index: {}]   ;;  %s1617_s3 = inlined_call_operand.hbm [shape: f32[30,32], index: 3, kind: input, shape index: {}]   ;;  %s1618_s4 = inlined_call_operand.vmem [shape: f32[8,32], index: 4, kind: input, shape index: {}]   ;;  %s1619_s5 = inlined_call_operand.vmem [shape: f32[1,32], index: 5, kind: input, shape index: {}]   ;;  %s1620_s6 = inlined_call_operand.hbm [shape: f32[8,8], index: 6, kind: output, shape index: {}]  }
   0x1   :  { %12 = vsyncpa [#allocation6], 0 }
   0x2   :  { %13 = vsyncpa [#allocation9], 0 }
   0x3   :  { %14 = vsyncpa [#allocation4], 0  ;;  %s1387_s21 = smov [#allocation5]   ;;  %s1388_s23 = smov [#allocation2]  }
   0x4   :  { %s33_s22 = sshll.u32 %s1387_s21, 4  ;;  %s20_s24 = sshll.u32 %s1388_s23, 4  ;;  %s34_s22 = int_to_ptr.vmem [resolvable:$true] %s33_s22  ;;  %s1435_s24 = int_to_ptr.vmem [resolvable:$true] %s20_s24 }
   0x5   :  { %s1269_s27 = scalar_lea.hbm %s1615_s1, 128 }
   0x6   :  { %p1270_p0 = scmp.ne.s32.totalorder %s1615_s1, %s1269_s27  ;;  %p1273_p1 = scmp.lt.u32.totalorder %s1269_s27, %s1615_s1 }
   0x8   :  { %p1275_p2 = pnand %p1273_p1, %p1270_p0 }
   0xa   :  { %1278 = shalt.err (!%p1275_p2)
}
   0xb   :  { %s1279_s8 = scalar_lea.vmem %s34_s22, 128  ;;  %p1284_p4 = scmp.lt.s32.totalorder %s34_s22, %s34_s22 }
   0xc   :  { %p1280_p3 = scmp.ne.s32.totalorder %s34_s22, %s1279_s8  ;;  %p1285_p5 = scmp.lt.s32.totalorder %s1279_s8, %s1279_s8 }
   0xe   :  { %p1286_p6 = por %p1285_p5, %p1284_p4 }
  0x10   :  { %p1287_p7 = pnand %p1286_p6, %p1280_p3 }
  0x12   :  { %1290 = shalt.err (!%p1287_p7)
}
  0x13   :  { %36 = dma.hbm_to_vmem [thread:$0]  %s1615_s1, 128, %s34_s22, [#allocation6]  }
  0x14   :  { %s1291_s13 = scalar_lea.hbm %s1614_s0, 1024 }
  0x15   :  { %p1292_p8 = scmp.ne.s32.totalorder %s1614_s0, %s1291_s13  ;;  %p1295_p9 = scmp.lt.u32.totalorder %s1291_s13, %s1614_s0 }
  0x17   :  { %p1297_p10 = pnand %p1295_p9, %p1292_p8 }
  0x19   :  { %1300 = shalt.err (!%p1297_p10)
}
  0x1a   :  { %s1301_s18 = scalar_lea.vmem %s1435_s24, 1024  ;;  %p1306_p12 = scmp.lt.s32.totalorder %s1435_s24, %s1435_s24 }
  0x1b   :  { %p1302_p11 = scmp.ne.s32.totalorder %s1435_s24, %s1301_s18  ;;  %p1307_p13 = scmp.lt.s32.totalorder %s1301_s18, %s1301_s18 }
  0x1d   :  { %p1308_p0 = por %p1307_p13, %p1306_p12 }
  0x1f   :  { %p1309_p1 = pnand %p1308_p0, %p1302_p11 }
  0x21   :  { %1312 = shalt.err (!%p1309_p1)
}
  0x22   :  { %s1389_s1 = smov 128   ;;  %s1390_s19 = smov 8  }
  0x23   :  { %26 = dma.hbm_to_vmem [thread:$0]  %s1614_s0, 1024, %s1435_s24, [#allocation3], %s1389_s1, %s1389_s1, %s1390_s19  }
  0x24   :  { %s1391_s22 = smov [#allocation7]   ;;  %s1392_s25 = smov [#allocation8]  }
  0x25   :  { %s43_s23 = sshll.u32 %s1391_s22, 4  ;;  %s52_s26 = sshll.u32 %s1392_s25, 4  ;;  %s44_s23 = int_to_ptr.vmem [resolvable:$true] %s43_s23  ;;  %s1469_s26 = int_to_ptr.vmem [resolvable:$true] %s52_s26 }
  0x26   :  { %s1313_s29 = scalar_lea.hbm %s1616_s2, 128 }
  0x27   :  { %p1314_p2 = scmp.ne.s32.totalorder %s1616_s2, %s1313_s29  ;;  %p1317_p3 = scmp.lt.u32.totalorder %s1313_s29, %s1616_s2 }
  0x29   :  { %p1319_p4 = pnand %p1317_p3, %p1314_p2 }
  0x2b   :  { %1322 = shalt.err (!%p1319_p4)
}
  0x2c   :  { %s1323_s0 = scalar_lea.vmem %s44_s23, 128  ;;  %p1328_p6 = scmp.lt.s32.totalorder %s44_s23, %s44_s23 }
  0x2d   :  { %p1324_p5 = scmp.ne.s32.totalorder %s44_s23, %s1323_s0  ;;  %p1329_p7 = scmp.lt.s32.totalorder %s1323_s0, %s1323_s0 }
  0x2f   :  { %p1330_p8 = por %p1329_p7, %p1328_p6 }
  0x31   :  { %p1331_p9 = pnand %p1330_p8, %p1324_p5 }
  0x33   :  { %1334 = shalt.err (!%p1331_p9)
}
  0x34   :  { %46 = dma.hbm_to_vmem [thread:$0]  %s1616_s2, 128, %s44_s23, [#allocation6]  }
  0x35   :  { %s1335_s13 = scalar_lea.hbm %s1617_s3, 512 }
  0x36   :  { %p1336_p10 = scmp.ne.s32.totalorder %s1617_s3, %s1335_s13  ;;  %p1339_p11 = scmp.lt.u32.totalorder %s1335_s13, %s1617_s3 }
  0x38   :  { %p1341_p12 = pnand %p1339_p11, %p1336_p10 }
  0x3a   :  { %1344 = shalt.err (!%p1341_p12)
}
  0x3b   :  { %s1345_s18 = scalar_lea.vmem %s1469_s26, 512  ;;  %p1350_p0 = scmp.lt.s32.totalorder %s1469_s26, %s1469_s26 }
  0x3c   :  { %p1346_p13 = scmp.ne.s32.totalorder %s1469_s26, %s1345_s18  ;;  %p1351_p1 = scmp.lt.s32.totalorder %s1345_s18, %s1345_s18 }
  0x3e   :  { %p1352_p2 = por %p1351_p1, %p1350_p0 }
  0x40   :  { %p1353_p3 = pnand %p1352_p2, %p1346_p13 }
  0x42   :  { %1356 = shalt.err (!%p1353_p3)
}
  0x43   :  { %58 = dma.hbm_to_vmem [thread:$0]  %s1617_s3, 512, %s1469_s26, [#allocation9], %s1389_s1, %s1389_s1, %s1390_s19  }
  0x44   :  { %1379 = dma.done.wait [#allocation3], 1024  }
  0x45   :  { %1380 = vsyncadd [#allocation3], 4294966272 }
  0x46   :  { %1381 = dma.done.wait [#allocation6], 256  }
  0x47   :  { %1382 = vsyncadd [#allocation6], 4294967040 }
  0x48   :  { %1383 = dma.done.wait [#allocation9], 512  }
  0x49   :  { %1384 = vsyncadd [#allocation9], 4294966784  ;;  %v1393_v0 = vmov 0.0   ;;  %vm1394_vm0 = vmmov 0   ;;  %vm120_vm1 = vcmask 1045504   ;;  %vm95_vm2 = vcmask 244736  }
  0x4a   :  { %1140 = vmatprep.subr.mxu1 %v1393_v0  ;;  %1142 = vmatprep.mubr.msk.f32.mxu1 %vm1394_vm0, %v1393_v0  ;;  %v75_v1 = vld [vmem:[#allocation8] sm:$0xff]  ;;  %v76_v2 = vld [vmem:[#allocation8 + $0x8] sm:$0xff]  ;;  %v77_v3 = vld [vmem:[#allocation8 + $0x10] sm:$0xff]  ;;  %vm231_vm3 = vcmask 64512   ;;  %vm1395_vm4 = vmmov 1   ;;  %s1396_s22 = smov 104  }
  0x4b   :  { %v1180_v4 = vpack.c.bf16 %v76_v2, %v75_v1  ;;  %v78_v5 = vld [vmem:[#allocation8 + $0x18] sm:$0x3f]  ;;  %v81_v6 = vld [vmem:[#allocation2] sm:$0xff]  ;;  %vm1185_vm5 = vmpackc.low %vm120_vm1, %vm1395_vm4  ;;  %vm1028_vm6 = vcmask 130112   ;;  %s1398_s23 = smov 120  }
  0x4c   :  { %v1184_v7 = vpack.c.bf16 %v78_v5, %v77_v3  ;;  %1128 = vmatprep.mubr.msk.f32.mxu0 %vm95_vm2, %v81_v6  ;;  %v1510_v8 = vld [vmem:[%s1618_s4] sm:$0xff]  ;;  %v82_v10 = vld [vmem:[#allocation2 + $0x8] sm:$0xff]  ;;  %v83_v48 = vld [vmem:[#allocation2 + $0x10] sm:$0xff] }
  0x4d   :  { %v229_v9 = vld [vmem:[#allocation5] sm:$0xff]  ;;  %1181 = vmatprep.subr.bf16.mxu0 %v1180_v4  ;;  %1141 = vmatpush3.msra.mxu1 %v1510_v8  ;;  %v230_v19 = vld [vmem:[#allocation7] sm:$0xff]  ;;  %v84_v49 = vld [vmem:[#allocation2 + $0x18] sm:$0xff] }
  0x4e   :  { %1183 = vmatpush3.bf16.msra.mxu0 %v1180_v4  ;;  %1143 = vmatmul.mubr.msk.f32.vlgmr.msra.gmra.mrb[0].mxu1 %vm231_vm3, %v229_v9  ;;  %v1525_v13 = vld [vmem:[%s1619_s5] ss:$0 sm:$0xff]  ;;  %s1397_s5 = smov 112  }
  0x4f   :  { %1186 = vmatprep.subr.msk.bf16.mxu0 %vm1185_vm5, %v1184_v7  ;;  %1145 = vmatprep.subr.mxu1 %v1393_v0 }
  0x50   :  { %1146 = vmatpush3.msra.mxu1 %v1510_v8  ;;  %1147 = vmatprep.mubr.msk.f32.mxu1 %vm1394_vm0, %v1393_v0 }
  0x51   :  { %1150 = vmatprep.subr.mxu1 %v1393_v0 }
  0x52   :  { %1189 = vmatpush3.bf16.msk.msra.mxu0 %vm1185_vm5, %v1184_v7 }
  0x53   :  { %1170 = vmatprep.subr.mxu0 %v1393_v0 }
  0x55   :  { %1129 = vmatmul.mubr.msk.f32.vlgmr.msra.gmra.mrb[0].mxu0 %vm95_vm2, %v82_v10 }
  0x56   :  { %1171 = vmatpush3.msra.mxu0 %v1510_v8  ;;  %1131 = vmatprep.mubr.msk.f32.mxu0 %vm95_vm2, %v83_v48 }
  0x59   :  { %1132 = vmatmul.mubr.msk.f32.gmra.mrb[2].mxu0 %vm95_vm2, %v84_v49 }
 0x121   :  { %v301_v11 = vpop.f32.mrb[0].mxu1 }
 0x122   :  { %v1144_v12 = vpop.f32.mrb[1].mxu1 }
 0x128   :  { %v1130_v14 = vpop.f32.mrb[0].mxu0 }
 0x129   :  { %v190_v15 = vpop.f32.mrb[1].mxu0  ;;  %v196_v34 = vadd.f32 %v1130_v14, %v1525_v13 }
 0x12a   :  { %v191_v16 = vadd.f32 %v1525_v13, %v190_v15 }
 0x12c   :  { %v305_v17 = vadd.f32 %v301_v11, %v191_v16  ;;  %v1133_v53 = vpop.f32.mrb[2].mxu0 }
 0x12d   :  { %v200_v54 = vpop.f32.mrb[3].mxu0  ;;  %v206_v12 = vadd.f32 %v1133_v53, %v1525_v13 }
 0x12e   :  { %1203 = vtanh.f32 %v305_v17  ;;  %v1077_v20 = vmul.f32 -1.442695, %v305_v17  ;;  %v201_v56 = vadd.f32 %v1525_v13, %v200_v54 }
 0x130   :  { %1205 = vpow2.f32 %v1077_v20 }
 0x138   :  { %v1204_v18 = vpop.eup %1203 }
 0x139   :  { %319 = vrot.lane.b32.xlu0 %v1204_v18, %s1396_s22 }
 0x13a   :  { %v1206_v21 = vpop.eup %1205 }
 0x13b   :  { %v309_v22 = vadd.f32 1.0, %v1206_v21 }
 0x13d   :  { %314 = vrot.lane.b32.xlu0 %v230_v19, %s1390_s19  ;;  %1207 = vrcp.f32 %v309_v22 }
 0x147   :  { %v1208_v23 = vpop.eup %1207 }
 0x1ab   :  { %v320_v24 = vpop.permute.xlu0 %319 }
 0x1ac   :  { %v322_v25 = vmul.f32 %v1208_v23, %v320_v24 }
 0x1ae   :  { %324 = vrot.lane.b32.xlu1 %v322_v25, %s1390_s19 }
 0x1af   :  { %v315_v26 = vpop.permute.xlu0 %314 }
 0x1b0   :  { %v317_v27 = vmul.f32 %v1208_v23, %v315_v26 }
 0x220   :  { %v325_v28 = vpop.permute.xlu1 %324 }
 0x221   :  { %v327_v29 = vadd.f32 %v325_v28, %v317_v27  ;;  %v85_v27 = vld [vmem:[#allocation2 + $0x20] sm:$0xff]  ;;  %v86_v28 = vld [vmem:[#allocation2 + $0x28] sm:$0xff] }
 0x222   :  { %1134 = vmatprep.mubr.msk.f32.mxu0 %vm95_vm2, %v85_v27 }
 0x223   :  { %1209 = vtanh.f32 %v327_v29  ;;  %1135 = vmatmul.mubr.msk.f32.gmra.mrb[4].mxu0 %vm95_vm2, %v86_v28 }
 0x22d   :  { %v1210_v30 = vpop.eup %1209 }
 0x22e   :  { %330 = vrot.lane.b32.xlu1 %v1210_v30, %s1390_s19 }
 0x2a0   :  { %v331_v31 = vpop.permute.xlu1 %330 }
 0x2a1   :  { %v333_v32 = vmul.f32 %v1208_v23, %v331_v31 }
 0x2a3   :  { %335 = vrot.lane.b32.xlu0 %v333_v32, %s1397_s5 }
 0x2f6   :  { %v1136_v32 = vpop.f32.mrb[4].mxu0 }
 0x2f7   :  { %v216_v53 = vadd.f32 %v1136_v32, %v1525_v13 }
 0x315   :  { %v336_v33 = vpop.permute.xlu0 %335 }
 0x316   :  { %1148 = vmatmul.mubr.msk.f32.vlgmr.msra.gmra.mrb[2].mxu1 %vm231_vm3, %v336_v33  ;;  %v210_v33 = vpop.f32.mrb[5].mxu0 }
 0x317   :  { %1151 = vmatpush3.msra.mxu1 %v1510_v8  ;;  %1152 = vmatprep.mubr.msk.f32.mxu1 %vm1394_vm0, %v1393_v0 }
 0x318   :  { %1155 = vmatprep.subr.mxu1 %v1393_v0 }
 0x3e9   :  { %v405_v35 = vpop.f32.mrb[2].mxu1 }
 0x3ea   :  { %v409_v36 = vadd.f32 %v405_v35, %v196_v34  ;;  %v1149_v37 = vpop.f32.mrb[3].mxu1  ;;  %v211_v35 = vadd.f32 %v1525_v13, %v210_v33 }
 0x3ec   :  { %1211 = vtanh.f32 %v409_v36  ;;  %v1079_v39 = vmul.f32 -1.442695, %v409_v36 }
 0x3ee   :  { %1213 = vpow2.f32 %v1079_v39 }
 0x3f6   :  { %v1212_v38 = vpop.eup %1211 }
 0x3f7   :  { %419 = vrot.lane.b32.xlu1 %v1212_v38, %s1396_s22 }
 0x3f8   :  { %v1214_v40 = vpop.eup %1213 }
 0x3f9   :  { %v413_v41 = vadd.f32 1.0, %v1214_v40 }
 0x3fb   :  { %1215 = vrcp.f32 %v413_v41 }
 0x405   :  { %v1216_v42 = vpop.eup %1215 }
 0x406   :  { %v417_v45 = vmul.f32 %v1216_v42, %v327_v29 }
 0x469   :  { %v420_v43 = vpop.permute.xlu1 %419 }
 0x46a   :  { %v422_v44 = vmul.f32 %v1216_v42, %v420_v43 }
 0x46c   :  { %424 = vrot.lane.b32.xlu0 %v422_v44, %s1390_s19 }
 0x4de   :  { %v425_v46 = vpop.permute.xlu0 %424 }
 0x4df   :  { %v427_v47 = vadd.f32 %v425_v46, %v417_v45 }
 0x4e1   :  { %1217 = vtanh.f32 %v427_v47 }
 0x4eb   :  { %v1218_v50 = vpop.eup %1217 }
 0x4ec   :  { %430 = vrot.lane.b32.xlu1 %v1218_v50, %s1390_s19 }
 0x55e   :  { %v431_v51 = vpop.permute.xlu1 %430 }
 0x55f   :  { %v433_v52 = vmul.f32 %v1216_v42, %v431_v51 }
 0x561   :  { %435 = vrot.lane.b32.xlu0 %v433_v52, %s1397_s5 }
 0x5d3   :  { %v436_v55 = vpop.permute.xlu0 %435 }
 0x5d4   :  { %1153 = vmatmul.mubr.msk.f32.vlgmr.msra.gmra.mrb[4].mxu1 %vm231_vm3, %v436_v55 }
 0x5d5   :  { %1156 = vmatpush3.msra.mxu1 %v1510_v8  ;;  %1157 = vmatprep.mubr.msk.f32.mxu1 %vm1394_vm0, %v1393_v0 }
 0x5d6   :  { %1160 = vmatprep.subr.mxu1 %v1393_v0 }
 0x6a7   :  { %v505_v57 = vpop.f32.mrb[4].mxu1 }
 0x6a8   :  { %v509_v58 = vadd.f32 %v505_v57, %v201_v56  ;;  %v1154_v59 = vpop.f32.mrb[5].mxu1 }
 0x6aa   :  { %1219 = vtanh.f32 %v509_v58  ;;  %v1081_v61 = vmul.f32 -1.442695, %v509_v58 }
 0x6ac   :  { %1221 = vpow2.f32 %v1081_v61 }
 0x6b4   :  { %v1220_v60 = vpop.eup %1219 }
 0x6b5   :  { %519 = vrot.lane.b32.xlu1 %v1220_v60, %s1396_s22 }
 0x6b6   :  { %v1222_v62 = vpop.eup %1221 }
 0x6b7   :  { %v513_v63 = vadd.f32 1.0, %v1222_v62 }
 0x6b9   :  { %1223 = vrcp.f32 %v513_v63 }
 0x6c3   :  { %v1224_v1 = vpop.eup %1223 }
 0x6c4   :  { %v517_v4 = vmul.f32 %v1224_v1, %v427_v47 }
 0x727   :  { %v520_v2 = vpop.permute.xlu1 %519 }
 0x728   :  { %v522_v3 = vmul.f32 %v1224_v1, %v520_v2 }
 0x72a   :  { %524 = vrot.lane.b32.xlu0 %v522_v3, %s1390_s19  ;;  %v87_v3 = vld [vmem:[#allocation2 + $0x30] sm:$0xff] }
 0x72b   :  { %1137 = vmatprep.mubr.msk.f32.mxu0 %vm95_vm2, %v87_v3 }
 0x79c   :  { %v525_v5 = vpop.permute.xlu0 %524 }
 0x79d   :  { %v527_v6 = vadd.f32 %v525_v5, %v517_v4  ;;  %v88_v4 = vld [vmem:[#allocation2 + $0x38] sm:$0xff] }
 0x79e   :  { %1138 = vmatmul.mubr.msk.f32.gmra.mrb[6].mxu0 %vm95_vm2, %v88_v4 }
 0x79f   :  { %1225 = vtanh.f32 %v527_v6  ;;  %1172 = vmatprep.mubr.msk.f32.mxu0 %vm1394_vm0, %v1393_v0 }
 0x7a9   :  { %v1226_v7 = vpop.eup %1225 }
 0x7aa   :  { %530 = vrot.lane.b32.xlu1 %v1226_v7, %s1390_s19 }
 0x81c   :  { %v531_v9 = vpop.permute.xlu1 %530 }
 0x81d   :  { %v533_v10 = vmul.f32 %v1224_v1, %v531_v9 }
 0x81f   :  { %535 = vrot.lane.b32.xlu0 %v533_v10, %s1397_s5 }
 0x871   :  { %v1139_v9 = vpop.f32.mrb[6].mxu0 }
 0x872   :  { %v220_v10 = vpop.f32.mrb[7].mxu0 }
 0x891   :  { %v536_v11 = vpop.permute.xlu0 %535 }
 0x892   :  { %1158 = vmatmul.mubr.msk.f32.vlgmr.msra.gmra.mrb[6].mxu1 %vm231_vm3, %v536_v11 }
 0x893   :  { %1161 = vmatpush3.msra.mxu1 %v1510_v8  ;;  %1162 = vmatprep.mubr.msk.f32.mxu1 %vm1394_vm0, %v1393_v0 }
 0x894   :  { %1165 = vmatprep.subr.mxu1 %v1393_v0 }
 0x965   :  { %v605_v14 = vpop.f32.mrb[6].mxu1 }
 0x966   :  { %v609_v15 = vadd.f32 %v605_v14, %v206_v12  ;;  %v1159_v16 = vpop.f32.mrb[7].mxu1  ;;  %v221_v12 = vadd.f32 %v1525_v13, %v220_v10 }
 0x968   :  { %1227 = vtanh.f32 %v609_v15  ;;  %v1083_v18 = vmul.f32 -1.442695, %v609_v15 }
 0x96a   :  { %1229 = vpow2.f32 %v1083_v18 }
 0x972   :  { %v1228_v17 = vpop.eup %1227 }
 0x973   :  { %619 = vrot.lane.b32.xlu1 %v1228_v17, %s1396_s22 }
 0x974   :  { %v1230_v19 = vpop.eup %1229 }
 0x975   :  { %v613_v20 = vadd.f32 1.0, %v1230_v19 }
 0x977   :  { %1231 = vrcp.f32 %v613_v20 }
 0x981   :  { %v1232_v21 = vpop.eup %1231 }
 0x982   :  { %v617_v24 = vmul.f32 %v1232_v21, %v527_v6 }
 0x9e5   :  { %v620_v22 = vpop.permute.xlu1 %619 }
 0x9e6   :  { %v622_v23 = vmul.f32 %v1232_v21, %v620_v22 }
 0x9e8   :  { %624 = vrot.lane.b32.xlu0 %v622_v23, %s1390_s19 }
 0xa5a   :  { %v625_v25 = vpop.permute.xlu0 %624 }
 0xa5b   :  { %v627_v26 = vadd.f32 %v625_v25, %v617_v24 }
 0xa5d   :  { %1233 = vtanh.f32 %v627_v26 }
 0xa67   :  { %v1234_v29 = vpop.eup %1233 }
 0xa68   :  { %630 = vrot.lane.b32.xlu1 %v1234_v29, %s1390_s19 }
 0xada   :  { %v631_v30 = vpop.permute.xlu1 %630 }
 0xadb   :  { %v633_v31 = vmul.f32 %v1232_v21, %v631_v30  ;;  %v226_v30 = vadd.f32 %v1139_v9, %v1525_v13 }
 0xadd   :  { %635 = vrot.lane.b32.xlu0 %v633_v31, %s1397_s5 }
 0xb4f   :  { %v636_v34 = vpop.permute.xlu0 %635 }
 0xb50   :  { %1163 = vmatmul.mubr.msk.f32.vlgmr.msra.gmra.mrb[8].mxu1 %vm231_vm3, %v636_v34 }
 0xb51   :  { %1166 = vmatpush3.msra.mxu1 %v1510_v8  ;;  %1167 = vmatprep.mubr.msk.f32.mxu1 %vm1394_vm0, %v1393_v0 }
 0xb52   :  { %1175 = vmatprep.subr.mxu1 %v1393_v0 }
 0xc23   :  { %v705_v36 = vpop.f32.mrb[8].mxu1 }
 0xc24   :  { %v709_v37 = vadd.f32 %v705_v36, %v211_v35  ;;  %v1164_v38 = vpop.f32.mrb[9].mxu1 }
 0xc26   :  { %1235 = vtanh.f32 %v709_v37  ;;  %v1085_v40 = vmul.f32 -1.442695, %v709_v37 }
 0xc28   :  { %1237 = vpow2.f32 %v1085_v40 }
 0xc30   :  { %v1236_v39 = vpop.eup %1235 }
 0xc31   :  { %719 = vrot.lane.b32.xlu1 %v1236_v39, %s1396_s22 }
 0xc32   :  { %v1238_v41 = vpop.eup %1237 }
 0xc33   :  { %v713_v42 = vadd.f32 1.0, %v1238_v41 }
 0xc35   :  { %1239 = vrcp.f32 %v713_v42 }
 0xc3f   :  { %v1240_v43 = vpop.eup %1239 }
 0xc40   :  { %v717_v46 = vmul.f32 %v1240_v43, %v627_v26 }
 0xca3   :  { %v720_v44 = vpop.permute.xlu1 %719 }
 0xca4   :  { %v722_v45 = vmul.f32 %v1240_v43, %v720_v44 }
 0xca6   :  { %724 = vrot.lane.b32.xlu0 %v722_v45, %s1390_s19 }
 0xd18   :  { %v725_v47 = vpop.permute.xlu0 %724 }
 0xd19   :  { %v727_v48 = vadd.f32 %v725_v47, %v717_v46 }
 0xd1b   :  { %1241 = vtanh.f32 %v727_v48 }
 0xd25   :  { %v1242_v49 = vpop.eup %1241 }
 0xd26   :  { %730 = vrot.lane.b32.xlu1 %v1242_v49, %s1390_s19 }
 0xd98   :  { %v731_v50 = vpop.permute.xlu1 %730 }
 0xd99   :  { %v733_v51 = vmul.f32 %v1240_v43, %v731_v50 }
 0xd9b   :  { %735 = vrot.lane.b32.xlu0 %v733_v51, %s1397_s5 }
 0xe0d   :  { %v736_v52 = vpop.permute.xlu0 %735 }
 0xe0e   :  { %1168 = vmatmul.mubr.msk.f32.vlgmr.msra.gmra.mrb[10].mxu1 %vm231_vm3, %v736_v52 }
 0xe0f   :  { %1176 = vmatpush3.msra.mxu1 %v1510_v8  ;;  %1177 = vmatprep.mubr.msk.f32.mxu1 %vm1394_vm0, %v1393_v0 }
 0xee1   :  { %v805_v54 = vpop.f32.mrb[10].mxu1 }
 0xee2   :  { %v809_v55 = vadd.f32 %v805_v54, %v216_v53  ;;  %v1169_v56 = vpop.f32.mrb[11].mxu1 }
 0xee4   :  { %1243 = vtanh.f32 %v809_v55  ;;  %v1087_v58 = vmul.f32 -1.442695, %v809_v55 }
 0xee6   :  { %1245 = vpow2.f32 %v1087_v58 }
 0xeee   :  { %v1244_v57 = vpop.eup %1243 }
 0xeef   :  { %819 = vrot.lane.b32.xlu1 %v1244_v57, %s1396_s22 }
 0xef0   :  { %v1246_v59 = vpop.eup %1245 }
 0xef1   :  { %v813_v60 = vadd.f32 1.0, %v1246_v59 }
 0xef3   :  { %1247 = vrcp.f32 %v813_v60 }
 0xefd   :  { %v1248_v61 = vpop.eup %1247 }
 0xefe   :  { %v817_v63 = vmul.f32 %v1248_v61, %v727_v48 }
 0xf61   :  { %v820_v62 = vpop.permute.xlu1 %819 }
 0xf62   :  { %v822_v8 = vmul.f32 %v1248_v61, %v820_v62 }
 0xf64   :  { %824 = vrot.lane.b32.xlu0 %v822_v8, %s1390_s19 }
 0xfd6   :  { %v825_v1 = vpop.permute.xlu0 %824 }
 0xfd7   :  { %v827_v2 = vadd.f32 %v825_v1, %v817_v63 }
 0xfd9   :  { %1249 = vtanh.f32 %v827_v2 }
 0xfe3   :  { %v1250_v5 = vpop.eup %1249 }
 0xfe4   :  { %830 = vrot.lane.b32.xlu1 %v1250_v5, %s1390_s19 }
0x1056   :  { %v831_v6 = vpop.permute.xlu1 %830 }
0x1057   :  { %v833_v7 = vmul.f32 %v1248_v61, %v831_v6 }
0x1059   :  { %835 = vrot.lane.b32.xlu0 %v833_v7, %s1397_s5 }
0x10cb   :  { %v836_v11 = vpop.permute.xlu0 %835 }
0x10cc   :  { %1173 = vmatmul.mubr.msk.f32.vlgmr.msra.gmra.mrb[8].mxu0 %vm231_vm3, %v836_v11 }
0x119f   :  { %v905_v14 = vpop.f32.mrb[8].mxu0 }
0x11a0   :  { %v909_v15 = vadd.f32 %v905_v14, %v221_v12  ;;  %v1174_v16 = vpop.f32.mrb[9].mxu0 }
0x11a2   :  { %1251 = vtanh.f32 %v909_v15  ;;  %v1089_v0 = vmul.f32 -1.442695, %v909_v15 }
0x11a4   :  { %1253 = vpow2.f32 %v1089_v0 }
0x11ac   :  { %v1252_v17 = vpop.eup %1251 }
0x11ad   :  { %919 = vrot.lane.b32.xlu1 %v1252_v17, %s1396_s22 }
0x11ae   :  { %v1254_v18 = vpop.eup %1253 }
0x11af   :  { %v913_v19 = vadd.f32 1.0, %v1254_v18 }
0x11b1   :  { %1255 = vrcp.f32 %v913_v19 }
0x11bb   :  { %v1256_v20 = vpop.eup %1255 }
0x11bc   :  { %v917_v23 = vmul.f32 %v1256_v20, %v827_v2 }
0x121f   :  { %v920_v21 = vpop.permute.xlu1 %919 }
0x1220   :  { %v922_v22 = vmul.f32 %v1256_v20, %v920_v21 }
0x1222   :  { %924 = vrot.lane.b32.xlu0 %v922_v22, %s1390_s19 }
0x1294   :  { %v925_v24 = vpop.permute.xlu0 %924 }
0x1295   :  { %v927_v25 = vadd.f32 %v925_v24, %v917_v23 }
0x1297   :  { %1257 = vtanh.f32 %v927_v25 }
0x12a1   :  { %v1258_v26 = vpop.eup %1257 }
0x12a2   :  { %930 = vrot.lane.b32.xlu1 %v1258_v26, %s1390_s19 }
0x1314   :  { %v931_v27 = vpop.permute.xlu1 %930 }
0x1315   :  { %v933_v28 = vmul.f32 %v1256_v20, %v931_v27 }
0x1317   :  { %935 = vrot.lane.b32.xlu0 %v933_v28, %s1397_s5 }
0x1389   :  { %v936_v29 = vpop.permute.xlu0 %935 }
0x138a   :  { %1178 = vmatmul.mubr.msk.f32.vlgmr.msra.gmra.mrb[12].mxu1 %vm231_vm3, %v936_v29 }
0x145d   :  { %v1005_v31 = vpop.f32.mrb[12].mxu1 }
0x145e   :  { %v1009_v32 = vadd.f32 %v1005_v31, %v226_v30  ;;  %v1179_v33 = vpop.f32.mrb[13].mxu1 }
0x1460   :  { %1259 = vtanh.f32 %v1009_v32  ;;  %v1091_v35 = vmul.f32 -1.442695, %v1009_v32 }
0x1462   :  { %1261 = vpow2.f32 %v1091_v35 }
0x146a   :  { %v1260_v34 = vpop.eup %1259 }
0x146b   :  { %1019 = vrot.lane.b32.xlu1 %v1260_v34, %s1396_s22 }
0x146c   :  { %v1262_v36 = vpop.eup %1261 }
0x146d   :  { %v1013_v37 = vadd.f32 1.0, %v1262_v36 }
0x146f   :  { %1263 = vrcp.f32 %v1013_v37 }
0x1479   :  { %v1264_v38 = vpop.eup %1263 }
0x147a   :  { %v1017_v41 = vmul.f32 %v1264_v38, %v927_v25 }
0x14dd   :  { %v1020_v39 = vpop.permute.xlu1 %1019 }
0x14de   :  { %v1022_v40 = vmul.f32 %v1264_v38, %v1020_v39 }
0x14e0   :  { %1024 = vrot.lane.b32.xlu0 %v1022_v40, %s1390_s19  ;;  %s1399_s19 = smov [#allocation10]  }
0x14e1   :  { %s1055_s25 = sshll.u32 %s1399_s19, 4  ;;  %s1056_s25 = int_to_ptr.vmem [resolvable:$true] %s1055_s25 }
0x14e2   :  { %s1357_s26 = scalar_lea.vmem %s1056_s25, 128  ;;  %p1362_p5 = scmp.lt.s32.totalorder %s1056_s25, %s1056_s25 }
0x14e3   :  { %p1358_p4 = scmp.ne.s32.totalorder %s1056_s25, %s1357_s26  ;;  %p1363_p6 = scmp.lt.s32.totalorder %s1357_s26, %s1357_s26 }
0x14e5   :  { %p1364_p7 = por %p1363_p6, %p1362_p5 }
0x14e7   :  { %p1365_p8 = pnand %p1364_p7, %p1358_p4 }
0x1552   :  { %v1025_v42 = vpop.permute.xlu0 %1024 }
0x1553   :  { %v1027_v13 = vadd.f32 %v1025_v42, %v1017_v41 }
0x1555   :  { %v1029_v43 = vsel %vm1028_vm6, %v1027_v13, -inf }
0x1556   :  { %1030 = vmax.xlane.f32.xlu1 %v1029_v43 }
0x15e3   :  { %v1031_v44 = vpop.xlane.xlu1 %1030 }
0x15e4   :  { %v1032_v45 = vsub.f32 %v1027_v13, %v1031_v44 }
0x15e6   :  { %v1033_v46 = vmul.f32 1.442695, %v1032_v45 }
0x15e8   :  { %1265 = vpow2.f32 %v1033_v46 }
0x15f2   :  { %v1266_v47 = vpop.eup %1265 }
0x15f3   :  { %1036 = vrot.lane.b32.xlu0 %v1266_v47, %s1398_s23 }
0x1665   :  { %v1037_v48 = vpop.permute.xlu0 %1036 }
0x1666   :  { %v1039_v49 = vsel %vm231_vm3, %v1037_v48, 0.0 }
0x1667   :  { %1040 = vadd.xlane.f32.xlu0 %v1039_v49 }
0x16f4   :  { %v1041_v50 = vpop.xlane.xlu0 %1040 }
0x16f5   :  { %1267 = vrcp.f32 %v1041_v50 }
0x16ff   :  { %v1268_v51 = vpop.eup %1267 }
0x1700   :  { %v1043_v52 = vmul.f32 %v1268_v51, %v1266_v47 }
0x1702   :  { %1045 = vrot.lane.b32.xlu1 %v1043_v52, %s1398_s23 }
0x1774   :  { %v1046_v53 = vpop.permute.xlu1 %1045 }
0x1775   :  { %1048 = vst.msk [vmem:[#allocation10] sm:$0xff] %vm231_vm3, %v1046_v53 }
0x1776   :  { %1368 = shalt.err (!%p1365_p8)
}
0x1777   :  { %s1369_s29 = scalar_lea.hbm %s1620_s6, 128 }
0x1778   :  { %p1370_p9 = scmp.ne.s32.totalorder %s1620_s6, %s1369_s29  ;;  %p1373_p10 = scmp.lt.u32.totalorder %s1369_s29, %s1620_s6 }
0x177a   :  { %p1375_p11 = pnand %p1373_p10, %p1370_p9 }
0x177c   :  { %1378 = shalt.err (!%p1375_p11)
}
0x177d   :  { %1058 = dma.vmem_to_hbm [thread:$0]  %s1056_s25, 128, %s1620_s6, [#allocation4]  }
0x177e   :  { %1385 = dma.done.wait [#allocation4], 128  }
0x177f   :  { %1386 = vsyncadd [#allocation4], 4294967168 }
0x1780   :  { %1062 = vsyncpa [#allocation3], 1 }
0x1781   :  { %1063 = vsyncpa [#allocation6], 1 }
0x1782   :  { %1064 = vsyncpa [#allocation9], 1 }
0x1783   :  { %1065 = vsyncpa [#allocation4], 1 }

</bundles_post_ra>
